<compile_context>
chip_gen: v6e
topology: v6e:2x2x1
jax: 0.10.0
libtpu: 0.0.40
codegen_flags: <defaults>
</compile_context>

<pallas_src>
import functools

import jax
import jax.numpy as jnp
from jax import lax
from jax.experimental import pallas as pl
from jax.experimental.pallas import tpu as pltpu

ALPHA = 100.0
EPS = 1e-12  # torch.nn.functional.normalize default eps


def netvlad_kernel(x_ref, c_ref, cn2_ref, bias_ref, cflat_ref, e_ref, t_ref,
                   o_ref, *, alpha):
    """NetVLAD head (spatial 1x1) for one batch tile, lane-dense output.

    x_ref:     (TN, C)   backbone embeddings (tile of the batch)
    c_ref:     (K, C)    centroids
    cn2_ref:   (1, K)    ||c_k||^2            (host precomputed)
    bias_ref:  (1, K)    -alpha * ||c_k||     (host precomputed conv bias)
    cflat_ref: (1, KC)   centroids flattened row-major
    e_ref:     (K, KC)   cluster-expansion matrix  E[k, k*C + c] = 1
    t_ref:     (C, KC)   channel-tiling matrix     T[c, k*C + c] = 1
    o_ref:     (TN, KC)  normalized, flattened VLAD descriptors
    """
    x = x_ref[...].astype(jnp.float32)          # (TN, C)
    c = c_ref[...].astype(jnp.float32)          # (K, C)
    cnorm2 = cn2_ref[...]                       # (1, K)
    bias = bias_ref[...]                        # (1, K)
    cf = cflat_ref[...]                         # (1, KC)
    E = e_ref[...]                              # (K, KC)
    T = t_ref[...]                              # (C, KC)

    # ---- F.normalize(x, p=2, dim=1): x * rsqrt(max(||x||^2, eps^2)) ----------
    xnorm2 = jnp.sum(x * x, axis=-1, keepdims=True)                 # (TN, 1)
    inv_x = lax.rsqrt(jnp.maximum(xnorm2, EPS * EPS))
    xn = x * inv_x                                                   # (TN, C)
    xnn2 = xnorm2 * (inv_x * inv_x)                                  # ||xn||^2

    # ---- 1x1 conv (weight = 2*alpha*c, bias = -alpha*||c_k||) + softmax ------
    dots = lax.dot_general(xn, c, (((1,), (1,)), ((), ())),
                           preferred_element_type=jnp.float32)       # (TN, K)
    logits = (2.0 * alpha) * dots + bias                             # (TN, K)
    m = jnp.max(logits, axis=-1, keepdims=True)
    e = jnp.exp(logits - m)
    a = e * pl.reciprocal(jnp.sum(e, axis=-1, keepdims=True), approx=True)

    # ---- intra-norm + global-norm entirely in (TN, K) -------------------------
    # ||a*(xn - c_k)||^2 = a^2*(||xn||^2 - 2 xn.c_k + ||c_k||^2); clamp >= 0
    # since rounding can push the (mathematically non-negative) sum below zero.
    dist2 = jnp.maximum(xnn2 - 2.0 * dots + cnorm2, 0.0)             # (TN, K)
    intra2 = (a * a) * dist2                                         # (TN, K)
    inv_intra = lax.rsqrt(jnp.maximum(intra2, EPS * EPS))            # (TN, K)
    g2 = jnp.sum(intra2 * (inv_intra * inv_intra),
                 axis=-1, keepdims=True)                             # (TN, 1)
    inv_g = lax.rsqrt(jnp.maximum(g2, EPS * EPS))                    # (TN, 1)

    # fused per-(n,k) weight, expanded ONCE into the lane-dense layout
    w = a * inv_intra * inv_g                                        # (TN, K)
    w_exp = jnp.dot(w, E, preferred_element_type=jnp.float32)        # (TN, KC)
    x_tile = jnp.dot(xn, T, preferred_element_type=jnp.float32)      # (TN, KC)

    # NOTE: the model-level F.normalize(nv_enc) after NetVLAD's own global
    # normalize is the identity (norm already 1), so it is dropped here.
    # NOTE: when N % block_n != 0 the padded tail rows compute on undefined VMEM
    # data; all math is row-independent and the writeback is clipped, so benign.
    o_ref[...] = (w_exp * (x_tile - cf)).astype(o_ref.dtype)         # lane-dense store


def _const_spec(shape):
    """Replicated constant input (index_map is constant): single-buffer it."""
    try:
        return pl.BlockSpec(shape, lambda i: (0, 0), pipeline_mode=pl.Buffered(1))
    except TypeError:  # older jax without pipeline_mode on BlockSpec
        return pl.BlockSpec(shape, lambda i: (0, 0))


def netvlad_pallas(emb, centroids, *, alpha=ALPHA, block_n=None,
                   out_dtype=jnp.float32):
    """emb: (N, C) float32, centroids: (K, C) float32 -> (N, K*C)."""
    N, C = emb.shape
    K, C2 = centroids.shape
    assert C == C2
    KC = K * C

    centroids = centroids.astype(jnp.float32)
    # host-side constants: ||c_k||^2, conv bias, flattened centroids, 0/1 maps
    cnorm2 = jnp.sum(centroids * centroids, axis=1).reshape(1, K)
    bias = -alpha * jnp.sqrt(cnorm2)
    c_flat = centroids.reshape(1, KC)
    j = jnp.arange(KC)
    E = ((j[None, :] // C) == jnp.arange(K)[:, None]).astype(jnp.float32)  # (K, KC)
    T = ((j[None, :] % C) == jnp.arange(C)[:, None]).astype(jnp.float32)   # (C, KC)

    if block_n is None:
        if N <= 8:
            block_n = N            # full-array block (satisfies the (8,128) rule)
        else:
            # ~4 MiB output slab cap (fused kernel keeps the working set well
            # under 32 MiB); grid-aware so v7x's 2 TensorCores both get a tile.
            cap = (4 * 1024 * 1024) // (KC * 4)
            cap = min(1024, max(8, (cap // 8) * 8))
            half = ((pl.cdiv(N, 2) + 7) // 8) * 8
            block_n = int(min(cap, half))

    grid = (pl.cdiv(N, block_n),)

    out = pl.pallas_call(
        functools.partial(netvlad_kernel, alpha=alpha),
        out_shape=jax.ShapeDtypeStruct((N, KC), out_dtype),
        grid=grid,
        in_specs=[
            pl.BlockSpec((block_n, C), lambda i: (i, 0)),   # batch-tiled embeddings
            _const_spec((K, C)),                            # centroids
            _const_spec((1, K)),                            # ||c_k||^2
            _const_spec((1, K)),                            # conv bias
            _const_spec((1, KC)),                           # flattened centroids
            _const_spec((K, KC)),                           # expansion matrix E
            _const_spec((C, KC)),                           # tiling matrix T
        ],
        out_specs=pl.BlockSpec((block_n, KC), lambda i: (i, 0)),
        compiler_params=pltpu.CompilerParams(
            dimension_semantics=("parallel",),
            vmem_limit_bytes=48 * 1024 * 1024,  # v5e's 16 MiB default is too small
        ),
    )(emb.astype(jnp.float32), centroids, cnorm2, bias, c_flat, E, T)
    return out


def init_params(key, *, c_in=3, dim=64, num_clusters=16, alpha=ALPHA):
    k1, k2, k3 = jax.random.split(key, 3)
    # centroids ~ torch.rand(num_clusters, dim); conv weight/bias are derived
    # from them exactly as in NetVLAD._init_params (bias precomputed host-side).
    centroids = jax.random.uniform(k1, (num_clusters, dim), jnp.float32)
    bk_w = jax.random.normal(k2, (c_in, dim), jnp.float32) * 0.1
    bk_b = jax.random.normal(k3, (dim,), jnp.float32) * 0.01
    return dict(centroids=centroids, bk_w=bk_w, bk_b=bk_b)


def model_forward(x_nchw, params, *, alpha=ALPHA):
    """Replicates Model.forward (classification=False): emb -> NetVLAD -> normalize."""
    # TODO(synk): resnet56 backbone is not defined in the provided source; stand-in
    # is global-average-pool + linear projection to `dim` (its fc is Identity anyway).
    emb = jnp.mean(x_nchw, axis=(2, 3))                 # (N, C_in)
    emb = emb @ params["bk_w"] + params["bk_b"]         # (N, dim)
    # emb.unsqueeze(-1).unsqueeze(-1) -> 1x1 spatial map; all NetVLAD math
    # (including the redundant model-level normalize) runs inside the kernel.
    return netvlad_pallas(emb, params["centroids"], alpha=alpha)


def netvlad_reference(emb, centroids, alpha=ALPHA):
    """Pure-JAX reference of the NetVLAD head + model-level normalize (spatial 1x1)."""
    eps = EPS
    xn = emb / jnp.clip(jnp.linalg.norm(emb, axis=1, keepdims=True), eps, None)
    bias = -alpha * jnp.linalg.norm(centroids, axis=1)
    logits = 2.0 * alpha * jnp.dot(xn, centroids.T,
                                   precision=lax.Precision.HIGHEST) + bias[None, :]
    a = jax.nn.softmax(logits, axis=1)
    resid = xn[:, None, :] - centroids[None, :, :]
    vlad = resid * a[:, :, None]
    vlad = vlad / jnp.clip(jnp.linalg.norm(vlad, axis=2, keepdims=True), eps, None)
    v = vlad.reshape(emb.shape[0], -1)
    v = v / jnp.clip(jnp.linalg.norm(v, axis=1, keepdims=True), eps, None)
    v = v / jnp.clip(jnp.linalg.norm(v, axis=1, keepdims=True), eps, None)
    return v


if __name__ == "__main__":
    key = jax.random.PRNGKey(0)
    kx, kp = jax.random.split(key)

    N, C_IN, H, W = 2, 3, 16, 16
    DIM, K = 64, 16

    x = jax.random.normal(kx, (N, C_IN, H, W), jnp.float32)   # NCHW, like PyTorch
    params = init_params(kp, c_in=C_IN, dim=DIM, num_clusters=K)

    out = jax.block_until_ready(model_forward(x, params))
    assert out.shape == (N, K * DIM), out.shape
    assert bool(jnp.all(jnp.isfinite(out)))

    # correctness check against a pure-JAX reference; in-kernel f32 MXU matmuls
    # may take bf16 passes at default precision, so allow a slightly looser tol.
    emb = jnp.mean(x, axis=(2, 3)) @ params["bk_w"] + params["bk_b"]
    ref = netvlad_reference(emb, params["centroids"])
    assert bool(jnp.allclose(out, ref, rtol=2e-3, atol=2e-3)), float(
        jnp.max(jnp.abs(out - ref)))

    print("KERNEL_OK")
</pallas_src>

<mosaic_0001>
module attributes {stable_mosaic.version = 11 : i64} {
  func.func @netvlad_kernel(%arg0: i32, %arg1: memref<2x64xf32, #tpu.memory_space<vmem>>, %arg2: memref<16x64xf32, #tpu.memory_space<vmem>>, %arg3: memref<1x16xf32, #tpu.memory_space<vmem>>, %arg4: memref<1x16xf32, #tpu.memory_space<vmem>>, %arg5: memref<1x1024xf32, #tpu.memory_space<vmem>>, %arg6: memref<16x1024xf32, #tpu.memory_space<vmem>>, %arg7: memref<64x1024xf32, #tpu.memory_space<vmem>>, %arg8: memref<2x1024xf32, #tpu.memory_space<vmem>>) attributes {dimension_semantics = [#tpu.dimension_semantics<parallel>], iteration_bounds = array<i64: 1>, scalar_prefetch = 0 : i64, scratch_operands = 0 : i64, tpu.core_type = #tpu.core_type<tc>, window_params = [{transform_indices = @transform_0, window_bounds = array<i64: 2, 64>}, {pipeline_mode = #tpu.pipeline_mode<synchronous>, transform_indices = @transform_1, window_bounds = array<i64: 16, 64>}, {pipeline_mode = #tpu.pipeline_mode<synchronous>, transform_indices = @transform_2, window_bounds = array<i64: 1, 16>}, {pipeline_mode = #tpu.pipeline_mode<synchronous>, transform_indices = @transform_3, window_bounds = array<i64: 1, 16>}, {pipeline_mode = #tpu.pipeline_mode<synchronous>, transform_indices = @transform_4, window_bounds = array<i64: 1, 1024>}, {pipeline_mode = #tpu.pipeline_mode<synchronous>, transform_indices = @transform_5, window_bounds = array<i64: 16, 1024>}, {pipeline_mode = #tpu.pipeline_mode<synchronous>, transform_indices = @transform_6, window_bounds = array<i64: 64, 1024>}, {transform_indices = @transform_7, window_bounds = array<i64: 2, 1024>}]} {
    %c0 = arith.constant 0 : index
    %c0_0 = arith.constant 0 : index
    %0 = vector.load %arg1[%c0, %c0_0] : memref<2x64xf32, #tpu.memory_space<vmem>>, vector<2x64xf32>
    %c0_1 = arith.constant 0 : index
    %c0_2 = arith.constant 0 : index
    %1 = vector.load %arg2[%c0_1, %c0_2] : memref<16x64xf32, #tpu.memory_space<vmem>>, vector<16x64xf32>
    %c0_3 = arith.constant 0 : index
    %c0_4 = arith.constant 0 : index
    %2 = vector.load %arg3[%c0_3, %c0_4] : memref<1x16xf32, #tpu.memory_space<vmem>>, vector<1x16xf32>
    %c0_5 = arith.constant 0 : index
    %c0_6 = arith.constant 0 : index
    %3 = vector.load %arg4[%c0_5, %c0_6] : memref<1x16xf32, #tpu.memory_space<vmem>>, vector<1x16xf32>
    %c0_7 = arith.constant 0 : index
    %c0_8 = arith.constant 0 : index
    %4 = vector.load %arg5[%c0_7, %c0_8] : memref<1x1024xf32, #tpu.memory_space<vmem>>, vector<1x1024xf32>
    %c0_9 = arith.constant 0 : index
    %c0_10 = arith.constant 0 : index
    %5 = vector.load %arg6[%c0_9, %c0_10] : memref<16x1024xf32, #tpu.memory_space<vmem>>, vector<16x1024xf32>
    %c0_11 = arith.constant 0 : index
    %c0_12 = arith.constant 0 : index
    %6 = vector.load %arg7[%c0_11, %c0_12] : memref<64x1024xf32, #tpu.memory_space<vmem>>, vector<64x1024xf32>
    %7 = arith.mulf %0, %0 : vector<2x64xf32>
    %cst = arith.constant dense<0.000000e+00> : vector<2xf32>
    %8 = vector.multi_reduction <add>, %7, %cst [1] : vector<2x64xf32> to vector<2xf32>
    %9 = vector.shape_cast %8 : vector<2xf32> to vector<2x1xf32>
    %cst_13 = arith.constant 1.000000e-24 : f32
    %10 = vector.broadcast %cst_13 : f32 to vector<2x1xf32>
    %11 = arith.maximumf %9, %10 : vector<2x1xf32>
    %12 = math.rsqrt %11 : vector<2x1xf32>
    %13 = vector.broadcast %12 : vector<2x1xf32> to vector<2x64xf32>
    %14 = arith.mulf %0, %13 : vector<2x64xf32>
    %15 = arith.mulf %12, %12 : vector<2x1xf32>
    %16 = arith.mulf %9, %15 : vector<2x1xf32>
    %cst_14 = arith.constant dense<0.000000e+00> : vector<2x16xf32>
    %17 = tpu.matmul %14, %1, %cst_14 {dimension_numbers = #tpu.dot_dimension_numbers<[1], [1], [0], [0], [0, 0, 1, 0], [], []>} : vector<2x64xf32>, vector<16x64xf32>, vector<2x16xf32> -> vector<2x16xf32>
    %cst_15 = arith.constant 2.000000e+02 : f32
    %18 = vector.broadcast %cst_15 : f32 to vector<2x16xf32>
    %19 = arith.mulf %18, %17 : vector<2x16xf32>
    %20 = vector.broadcast %3 : vector<1x16xf32> to vector<2x16xf32>
    %21 = arith.addf %19, %20 : vector<2x16xf32>
    %cst_16 = arith.constant dense<0xFF800000> : vector<2xf32>
    %22 = vector.multi_reduction <maximumf>, %21, %cst_16 [1] : vector<2x16xf32> to vector<2xf32>
    %23 = vector.shape_cast %22 : vector<2xf32> to vector<2x1xf32>
    %24 = vector.broadcast %23 : vector<2x1xf32> to vector<2x16xf32>
    %25 = arith.subf %21, %24 : vector<2x16xf32>
    %26 = math.exp %25 : vector<2x16xf32>
    %cst_17 = arith.constant dense<0.000000e+00> : vector<2xf32>
    %27 = vector.multi_reduction <add>, %26, %cst_17 [1] : vector<2x16xf32> to vector<2xf32>
    %28 = vector.shape_cast %27 : vector<2xf32> to vector<2x1xf32>
    %29 = tpu.reciprocal %28 {approx = true} : vector<2x1xf32> -> vector<2x1xf32>
    %30 = vector.broadcast %29 : vector<2x1xf32> to vector<2x16xf32>
    %31 = arith.mulf %26, %30 : vector<2x16xf32>
    %cst_18 = arith.constant 2.000000e+00 : f32
    %32 = vector.broadcast %cst_18 : f32 to vector<2x16xf32>
    %33 = arith.mulf %32, %17 : vector<2x16xf32>
    %34 = vector.broadcast %16 : vector<2x1xf32> to vector<2x16xf32>
    %35 = arith.subf %34, %33 : vector<2x16xf32>
    %36 = vector.broadcast %2 : vector<1x16xf32> to vector<2x16xf32>
    %37 = arith.addf %35, %36 : vector<2x16xf32>
    %cst_19 = arith.constant 0.000000e+00 : f32
    %38 = vector.broadcast %cst_19 : f32 to vector<2x16xf32>
    %39 = arith.maximumf %37, %38 : vector<2x16xf32>
    %40 = arith.mulf %31, %31 : vector<2x16xf32>
    %41 = arith.mulf %40, %39 : vector<2x16xf32>
    %cst_20 = arith.constant 1.000000e-24 : f32
    %42 = vector.broadcast %cst_20 : f32 to vector<2x16xf32>
    %43 = arith.maximumf %41, %42 : vector<2x16xf32>
    %44 = math.rsqrt %43 : vector<2x16xf32>
    %45 = arith.mulf %44, %44 : vector<2x16xf32>
    %46 = arith.mulf %41, %45 : vector<2x16xf32>
    %cst_21 = arith.constant dense<0.000000e+00> : vector<2xf32>
    %47 = vector.multi_reduction <add>, %46, %cst_21 [1] : vector<2x16xf32> to vector<2xf32>
    %48 = vector.shape_cast %47 : vector<2xf32> to vector<2x1xf32>
    %cst_22 = arith.constant 1.000000e-24 : f32
    %49 = vector.broadcast %cst_22 : f32 to vector<2x1xf32>
    %50 = arith.maximumf %48, %49 : vector<2x1xf32>
    %51 = math.rsqrt %50 : vector<2x1xf32>
    %52 = arith.mulf %31, %44 : vector<2x16xf32>
    %53 = vector.broadcast %51 : vector<2x1xf32> to vector<2x16xf32>
    %54 = arith.mulf %52, %53 : vector<2x16xf32>
    %cst_23 = arith.constant dense<0.000000e+00> : vector<2x1024xf32>
    %55 = tpu.matmul %54, %5, %cst_23 {dimension_numbers = #tpu.dot_dimension_numbers<[1], [0], [0], [1], [0, 0, 1, 1], [], []>} : vector<2x16xf32>, vector<16x1024xf32>, vector<2x1024xf32> -> vector<2x1024xf32>
    %cst_24 = arith.constant dense<0.000000e+00> : vector<2x1024xf32>
    %56 = tpu.matmul %14, %6, %cst_24 {dimension_numbers = #tpu.dot_dimension_numbers<[1], [0], [0], [1], [0, 0, 1, 1], [], []>} : vector<2x64xf32>, vector<64x1024xf32>, vector<2x1024xf32> -> vector<2x1024xf32>
    %57 = vector.broadcast %4 : vector<1x1024xf32> to vector<2x1024xf32>
    %58 = arith.subf %56, %57 : vector<2x1024xf32>
    %59 = arith.mulf %55, %58 : vector<2x1024xf32>
    %c0_25 = arith.constant 0 : index
    %c0_26 = arith.constant 0 : index
    %60 = vector.load %arg8[%c0_25, %c0_26] : memref<2x1024xf32, #tpu.memory_space<vmem>>, vector<2x1024xf32>
    tpu.vector_store %arg8[%c0_25, %c0_26], %59 {strides = array<i32>} : memref<2x1024xf32, #tpu.memory_space<vmem>>, vector<2x1024xf32>,
    return
  }
  func.func @transform_0(%arg0: i32) -> (i32, i32) {
    %c0_i32 = arith.constant 0 : i32
    %c0_i32_0 = arith.constant 0 : i32
    return %arg0, %c0_i32 : i32, i32
  }
  func.func @transform_1(%arg0: i32) -> (i32, i32) {
    %c0_i32 = arith.constant 0 : i32
    %c0_i32_0 = arith.constant 0 : i32
    %c0_i32_1 = arith.constant 0 : i32
    return %c0_i32, %c0_i32_0 : i32, i32
  }
  func.func @transform_2(%arg0: i32) -> (i32, i32) {
    %c0_i32 = arith.constant 0 : i32
    %c0_i32_0 = arith.constant 0 : i32
    %c0_i32_1 = arith.constant 0 : i32
    return %c0_i32, %c0_i32_0 : i32, i32
  }
  func.func @transform_3(%arg0: i32) -> (i32, i32) {
    %c0_i32 = arith.constant 0 : i32
    %c0_i32_0 = arith.constant 0 : i32
    %c0_i32_1 = arith.constant 0 : i32
    return %c0_i32, %c0_i32_0 : i32, i32
  }
  func.func @transform_4(%arg0: i32) -> (i32, i32) {
    %c0_i32 = arith.constant 0 : i32
    %c0_i32_0 = arith.constant 0 : i32
    %c0_i32_1 = arith.constant 0 : i32
    return %c0_i32, %c0_i32_0 : i32, i32
  }
  func.func @transform_5(%arg0: i32) -> (i32, i32) {
    %c0_i32 = arith.constant 0 : i32
    %c0_i32_0 = arith.constant 0 : i32
    %c0_i32_1 = arith.constant 0 : i32
    return %c0_i32, %c0_i32_0 : i32, i32
  }
  func.func @transform_6(%arg0: i32) -> (i32, i32) {
    %c0_i32 = arith.constant 0 : i32
    %c0_i32_0 = arith.constant 0 : i32
    %c0_i32_1 = arith.constant 0 : i32
    return %c0_i32, %c0_i32_0 : i32, i32
  }
  func.func @transform_7(%arg0: i32) -> (i32, i32) {
    %c0_i32 = arith.constant 0 : i32
    %c0_i32_0 = arith.constant 0 : i32
    return %arg0, %c0_i32 : i32, i32
  }
}

</mosaic_0001>

<bundles_post_ra>
// kernel: tpu_custom_call.1
= control target key start
LH: loop header
LB: loop body
LE: loop exit
PB: predicated region body
PF: predicated region fallthrough
CT: control target
= control target key end

     0   :  { %12 = vsyncpa [#allocation3], 0  ;;  %s1291_s0 = inlined_call_operand.hbm [shape: f32[2,64], index: 0, kind: input, shape index: {}]   ;;  %s1292_s1 = inlined_call_operand.hbm [shape: f32[16,64], index: 1, kind: input, shape index: {}]   ;;  %s1293_s2 = inlined_call_operand.vmem [shape: f32[1,16], index: 2, kind: input, shape index: {}]   ;;  %s1294_s3 = inlined_call_operand.vmem [shape: f32[1,16], index: 3, kind: input, shape index: {}]   ;;  %s1295_s4 = inlined_call_operand.hbm [shape: f32[1,1024], index: 4, kind: input, shape index: {}]   ;;  %s1296_s5 = inlined_call_operand.hbm [shape: f32[16,1024], index: 5, kind: input, shape index: {}]   ;;  %s1297_s6 = inlined_call_operand.hbm [shape: f32[64,1024], index: 6, kind: input, shape index: {}]   ;;  %s1298_s7 = inlined_call_operand.hbm [shape: f32[2,1024], index: 7, kind: output, shape index: {}]  }
   0x1   :  { %13 = vsyncpa [#allocation6], 0 }
   0x2   :  { %14 = vsyncpa [#allocation9], 0 }
   0x3   :  { %15 = vsyncpa [#allocation4], 0  ;;  %s1176_s24 = smov [#allocation5]  }
   0x4   :  { %s31_s25 = sshll.u32 %s1176_s24, 4  ;;  %s32_s25 = int_to_ptr.vmem [resolvable:$true] %s31_s25 }
   0x5   :  { %s1056_s26 = scalar_lea.vmem %s32_s25, 256  ;;  %p1061_p1 = scmp.lt.s32.totalorder %s32_s25, %s32_s25 }
   0x6   :  { %p1057_p0 = scmp.ne.s32.totalorder %s32_s25, %s1056_s26  ;;  %p1062_p2 = scmp.lt.s32.totalorder %s1056_s26, %s1056_s26 }
   0x8   :  { %p1063_p3 = por %p1062_p2, %p1061_p1 }
   0xa   :  { %p1064_p4 = pnand %p1063_p3, %p1057_p0 }
   0xc   :  { %1067 = shalt.err (!%p1064_p4)
}
   0xd   :  { %s1177_s27 = smov 128   ;;  %s1178_s28 = smov 8  }
   0xe   :  { %37 = dma.hbm_to_vmem [thread:$0]  %s1292_s1, 256, %s32_s25, [#allocation6], %s1177_s27, %s1177_s27, %s1178_s28  }
   0xf   :  { %s1179_s8 = smov [#allocation8]  }
  0x10   :  { %s57_s9 = sshll.u32 %s1179_s8, 4  ;;  %s58_s9 = int_to_ptr.vmem [resolvable:$true] %s57_s9 }
  0x11   :  { %s1076_s10 = scalar_lea.vmem %s58_s9, 2048  ;;  %p1081_p6 = scmp.lt.s32.totalorder %s58_s9, %s58_s9 }
  0x12   :  { %p1077_p5 = scmp.ne.s32.totalorder %s58_s9, %s1076_s10  ;;  %p1082_p7 = scmp.lt.s32.totalorder %s1076_s10, %s1076_s10 }
  0x14   :  { %p1083_p8 = por %p1082_p7, %p1081_p6 }
  0x16   :  { %p1084_p9 = pnand %p1083_p8, %p1077_p5 }
  0x18   :  { %1087 = shalt.err (!%p1084_p9)
}
  0x19   :  { %s1180_s11 = smov 1024   ;;  %s1181_s12 = smov 64  }
  0x1a   :  { %63 = dma.hbm_to_vmem [thread:$0]  %s1296_s5, 2048, %s58_s9, [#allocation9], %s1180_s11, %s1180_s11, %s1181_s12  }
  0x1b   :  { %s1182_s1 = smov [#allocation2]   ;;  %s1183_s16 = smov [#allocation7]  }
  0x1c   :  { %s22_s15 = sshll.u32 %s1182_s1, 4  ;;  %s48_s17 = sshll.u32 %s1183_s16, 4  ;;  %s23_s15 = int_to_ptr.vmem [resolvable:$true] %s22_s15  ;;  %s49_s17 = int_to_ptr.vmem [resolvable:$true] %s48_s17 }
  0x1d   :  { %s1096_s18 = scalar_lea.vmem %s23_s15, 32  ;;  %p1101_p11 = scmp.lt.s32.totalorder %s23_s15, %s23_s15 }
  0x1e   :  { %p1097_p10 = scmp.ne.s32.totalorder %s23_s15, %s1096_s18  ;;  %p1102_p12 = scmp.lt.s32.totalorder %s1096_s18, %s1096_s18 }
  0x20   :  { %p1103_p13 = por %p1102_p12, %p1101_p11 }
  0x22   :  { %p1104_p0 = pnand %p1103_p13, %p1097_p10 }
  0x24   :  { %1107 = shalt.err (!%p1104_p0)
}
  0x25   :  { %25 = dma.hbm_to_vmem [thread:$0]  %s1291_s0, 32, %s23_s15, [#allocation3]  }
  0x26   :  { %s1116_s21 = scalar_lea.vmem %s49_s17, 128  ;;  %p1121_p2 = scmp.lt.s32.totalorder %s49_s17, %s49_s17 }
  0x27   :  { %p1117_p1 = scmp.ne.s32.totalorder %s49_s17, %s1116_s21  ;;  %p1122_p3 = scmp.lt.s32.totalorder %s1116_s21, %s1116_s21 }
  0x29   :  { %p1123_p4 = por %p1122_p3, %p1121_p2 }
  0x2b   :  { %p1124_p5 = pnand %p1123_p4, %p1117_p1 }
  0x2d   :  { %1127 = shalt.err (!%p1124_p5)
}
  0x2e   :  { %51 = dma.hbm_to_vmem [thread:$0]  %s1295_s4, 128, %s49_s17, [#allocation6]  }
  0x2f   :  { %s1184_s23 = smov [#allocation10]  }
  0x30   :  { %s69_s24 = sshll.u32 %s1184_s23, 4  ;;  %s70_s24 = int_to_ptr.vmem [resolvable:$true] %s69_s24 }
  0x31   :  { %s1136_s25 = scalar_lea.vmem %s70_s24, 8192  ;;  %p1141_p7 = scmp.lt.s32.totalorder %s70_s24, %s70_s24 }
  0x32   :  { %p1137_p6 = scmp.ne.s32.totalorder %s70_s24, %s1136_s25  ;;  %p1142_p8 = scmp.lt.s32.totalorder %s1136_s25, %s1136_s25 }
  0x34   :  { %p1143_p9 = por %p1142_p8, %p1141_p7 }
  0x36   :  { %p1144_p10 = pnand %p1143_p9, %p1137_p6 }
  0x38   :  { %1147 = shalt.err (!%p1144_p10)
}
  0x39   :  { %75 = dma.hbm_to_vmem [thread:$0]  %s1297_s6, 8192, %s70_s24, [#allocation9], %s1180_s11, %s1180_s11, %s1181_s12  }
  0x3a   :  { %1168 = dma.done.wait [#allocation3], 32  }
  0x3b   :  { %1169 = vsyncadd [#allocation3], 4294967264 }
  0x3c   :  { %1170 = dma.done.wait [#allocation6], 384  }
  0x3d   :  { %1171 = vsyncadd [#allocation6], 4294966912 }
  0x3e   :  { %1172 = dma.done.wait [#allocation9], 10240  }
  0x3f   :  { %1173 = vsyncadd [#allocation9], 4294957056  ;;  %v91_v0 = vld [vmem:[#allocation2] sm:$0x3]  ;;  %vm178_vm0 = vcmask 517120   ;;  %v1185_v3 = vmov 0.0  }
  0x40   :  { %v177_v1 = vmul.f32 %v91_v0, %v91_v0  ;;  %1018 = vmatprep.subr.mxu0 %v1185_v3  ;;  %v93_v4 = vld [vmem:[#allocation5 + $0x8] sm:$0xff]  ;;  %vm187_vm1 = vcmask 523264   ;;  %378 = vmatprep.mubr.f32.mxu1 %v1185_v3  ;;  %v92_v5 = vld [vmem:[#allocation5] sm:$0xff]  ;;  %vm1186_vm2 = vmmov 0   ;;  %v1005_v12 = vld [vmem:[%s1294_s3] ss:$0 sm:$0xff] }
  0x41   :  { %1019 = vmatpush3.xpose.msk.msra.mxu0 %vm187_vm1, %v93_v4  ;;  %1022 = vmatprep.mubr.msk.f32.mxu0 %vm1186_vm2, %v1185_v3  ;;  %vm275_vm3 = vcmask 123904   ;;  %v1006_v26 = vld [vmem:[%s1293_s2] ss:$0 sm:$0xff]  ;;  %v106_v39 = vld [vmem:[#allocation8 + $0x48] sm:$0xff]  ;;  %v108_v47 = vld [vmem:[#allocation8 + $0x58] sm:$0xff]  ;;  %vm310_vm4 = vcmask 130048  }
  0x42   :  { %v179_v2 = vsel %vm178_vm0, %v177_v1, 0.0  ;;  %1020 = vmatprep.subr.mxu0 %v1185_v3  ;;  %v110_v40 = vld [vmem:[#allocation8 + $0x68] sm:$0xff]  ;;  %v105_v41 = vld [vmem:[#allocation8 + $0x40] sm:$0xff]  ;;  %342 = vmatprep.subr.mxu1 %v106_v39  ;;  %v107_v53 = vld [vmem:[#allocation8 + $0x50] sm:$0xff]  ;;  %s1188_s2 = smov [#allocation11]  }
  0x43   :  { %180 = vadd.xlane.f32.xlu0 %v179_v2  ;;  %v109_v42 = vld [vmem:[#allocation8 + $0x60] sm:$0xff]  ;;  %v98_v43 = vld [vmem:[#allocation8 + $0x8] sm:$0xff]  ;;  %343 = vmatpush1.msra.mxu1 %v105_v41  ;;  %v100_v55 = vld [vmem:[#allocation8 + $0x18] sm:$0xff]  ;;  %s991_s28 = sshll.u32 %s1188_s2, 4  ;;  %s992_s28 = int_to_ptr.vmem [resolvable:$true] %s991_s28 }
  0x44   :  { %v102_v44 = vld [vmem:[#allocation8 + $0x28] sm:$0xff]  ;;  %v97_v45 = vld [vmem:[#allocation8] sm:$0xff]  ;;  %344 = vmatprep.subr.mxu1 %v98_v43  ;;  %v99_v57 = vld [vmem:[#allocation8 + $0x10] sm:$0xff]  ;;  %s1148_s29 = scalar_lea.vmem %s992_s28, 256  ;;  %p1153_p12 = scmp.lt.s32.totalorder %s992_s28, %s992_s28 }
  0x45   :  { %1021 = vmatpush3.xpose.msk.msra.mxu0 %vm187_vm1, %v92_v5  ;;  %v101_v46 = vld [vmem:[#allocation8 + $0x20] sm:$0xff]  ;;  %v170_v48 = vld [vmem:[#allocation10 + $0x1c8] sm:$0xff]  ;;  %345 = vmatpush1.msra.mxu1 %v97_v45  ;;  %v112_v59 = vld [vmem:[#allocation8 + $0x78] sm:$0xff]  ;;  %p1149_p11 = scmp.ne.s32.totalorder %s992_s28, %s1148_s29  ;;  %p1154_p13 = scmp.lt.s32.totalorder %s1148_s29, %s1148_s29 }
  0x46   :  { %484 = vmatprep.subr.mxu0 %v110_v40  ;;  %413 = vmatprep.subr.mxu1 %v108_v47  ;;  %v169_v54 = vld [vmem:[#allocation10 + $0x1c0] sm:$0xff]  ;;  %v162_v56 = vld [vmem:[#allocation10 + $0x188] sm:$0xff]  ;;  %v111_v61 = vld [vmem:[#allocation8 + $0x70] sm:$0xff] }
  0x47   :  { %v161_v58 = vld [vmem:[#allocation10 + $0x180] sm:$0xff]  ;;  %v154_v60 = vld [vmem:[#allocation10 + $0x148] sm:$0xff]  ;;  %v104_v63 = vld [vmem:[#allocation8 + $0x38] sm:$0xff]  ;;  %p1155_p0 = por %p1154_p13, %p1153_p12 }
  0x48   :  { %v153_v62 = vld [vmem:[#allocation10 + $0x140] sm:$0xff]  ;;  %v103_v1 = vld [vmem:[#allocation8 + $0x30] sm:$0xff]  ;;  %v138_v4 = vld [vmem:[#allocation10 + $0xc8] sm:$0xff] }
  0x49   :  { %v145_v2 = vld [vmem:[#allocation10 + $0x100] sm:$0xff]  ;;  %v172_v5 = vld [vmem:[#allocation10 + $0x1d8] sm:$0xff]  ;;  %v175_v40 = vld [vmem:[#allocation10 + $0x1f0] sm:$0xff]  ;;  %p1156_p1 = pnand %p1155_p0, %p1149_p11 }
  0x4a   :  { %v141_v39 = vld [vmem:[#allocation10 + $0xe0] sm:$0xff]  ;;  %v134_v41 = vld [vmem:[#allocation10 + $0xa8] sm:$0xff] }
  0x4b   :  { %v133_v43 = vld [vmem:[#allocation10 + $0xa0] sm:$0xff]  ;;  %v126_v45 = vld [vmem:[#allocation10 + $0x68] sm:$0xff] }
  0x4c   :  { %v125_v47 = vld [vmem:[#allocation10 + $0x60] sm:$0xff] }
  0xcc   :  { %v181_v6 = vpop.xlane.xlu0 %180 }
  0xcd   :  { %v182_v7 = vmax.f32 %v181_v6, 1e-24 }
  0xcf   :  { %1038 = vrsqrt.f32 %v182_v7  ;;  %v171_v7 = vld [vmem:[#allocation10 + $0x1d0] sm:$0xff] }
  0xdc   :  { %v1039_v8 = vpop.eup %1038 }
  0xdd   :  { %v1256_v9 = vmul.f32 %v1039_v8, %v91_v0  ;;  %v185_v10 = vmul.f32 %v1039_v8, %v1039_v8  ;;  %v146_v0 = vld [vmem:[#allocation10 + $0x108] sm:$0xff] }
  0xde   :  { %v130_v8 = vld [vmem:[#allocation10 + $0x88] sm:$0xff] }
  0xdf   :  { %1023 = vmatmul.mubr.msk.f32.vlgmr.msra.gmra.mxu0 %vm187_vm1, %v1256_v9  ;;  %v186_v13 = vmul.f32 %v185_v10, %v181_v6  ;;  %v137_v6 = vld [vmem:[#allocation10 + $0xc0] sm:$0xff]  ;;  %v164_v10 = vld [vmem:[#allocation10 + $0x198] sm:$0xff] }
  0xe0   :  { %520 = vmatprep.mubr.f32.mxu0 %v1185_v3  ;;  %485 = vmatpush1.msra.mxu0 %v109_v42  ;;  %v168_v42 = vld [vmem:[#allocation10 + $0x1b8] sm:$0xff] }
  0xe1   :  { %486 = vmatprep.subr.mxu0 %v102_v44  ;;  %v167_v44 = vld [vmem:[#allocation10 + $0x1b0] sm:$0xff] }
  0xe2   :  { %487 = vmatpush1.msra.mxu0 %v101_v46  ;;  %v160_v46 = vld [vmem:[#allocation10 + $0x178] sm:$0xff] }
  0xe3   :  { %614 = vmatprep.subr.mxu0 %v170_v48  ;;  %v159_v48 = vld [vmem:[#allocation10 + $0x170] sm:$0xff] }
 0x19f   :  { %v263_v11 = vpop.f32.mrf.mxu0 }
 0x1a0   :  { %v267_v14 = vmul.f32 200.0, %v263_v11  ;;  %v287_v15 = vmul.f32 2.0, %v263_v11  ;;  %v129_v11 = vld [vmem:[#allocation10 + $0x80] sm:$0xff] }
 0x1a1   :  { %v1024_v16 = vpop.f32.mrf.mxu0 }
 0x1a2   :  { %v288_v17 = vsub.f32 %v186_v13, %v287_v15  ;;  %v274_v18 = vadd.f32 %v1005_v12, %v267_v14  ;;  %v163_v12 = vld [vmem:[#allocation10 + $0x190] sm:$0xff]  ;;  %v122_v13 = vld [vmem:[#allocation10 + $0x48] sm:$0xff]  ;;  %v156_v14 = vld [vmem:[#allocation10 + $0x158] sm:$0xff] }
 0x1a3   :  { %v121_v15 = vld [vmem:[#allocation10 + $0x40] sm:$0xff]  ;;  %v155_v16 = vld [vmem:[#allocation10 + $0x150] sm:$0xff] }
 0x1a4   :  { %v276_v19 = vsel %vm275_vm3, %v274_v18, -inf  ;;  %v295_v27 = vadd.f32 %v1006_v26, %v288_v17  ;;  %v114_v17 = vld [vmem:[#allocation10 + $0x8] sm:$0xff] }
 0x1a5   :  { %277 = vmax.xlane.f32.xlu0 %v276_v19  ;;  %v113_v19 = vld [vmem:[#allocation10] sm:$0xff]  ;;  %v166_v26 = vld [vmem:[#allocation10 + $0x1a8] sm:$0xff] }
 0x1a6   :  { %v296_v30 = vmax.f32 %v295_v27, 0.0  ;;  %v131_v27 = vld [vmem:[#allocation10 + $0x90] sm:$0xff] }
 0x22e   :  { %v278_v20 = vpop.xlane.xlu0 %277 }
 0x22f   :  { %v279_v21 = vsub.f32 %v274_v18, %v278_v20  ;;  %v148_v18 = vld [vmem:[#allocation10 + $0x118] sm:$0xff]  ;;  %v147_v20 = vld [vmem:[#allocation10 + $0x110] sm:$0xff] }
 0x231   :  { %v280_v22 = vmul.f32 1.442695, %v279_v21  ;;  %v140_v21 = vld [vmem:[#allocation10 + $0xd8] sm:$0xff] }
 0x233   :  { %1040 = vpow2.f32 %v280_v22  ;;  %v174_v22 = vld [vmem:[#allocation10 + $0x1e8] sm:$0xff] }
 0x240   :  { %v1041_v23 = vpop.eup %1040 }
 0x241   :  { %v282_v24 = vsel %vm275_vm3, %v1041_v23, 0.0 }
 0x242   :  { %283 = vadd.xlane.f32.xlu1 %v282_v24  ;;  %v173_v24 = vld [vmem:[#allocation10 + $0x1e0] sm:$0xff] }
 0x2cb   :  { %v284_v25 = vpop.xlane.xlu1 %283 }
 0x2cc   :  { %1042 = vrcp.f32 %v284_v25  ;;  %v132_v25 = vld [vmem:[#allocation10 + $0x98] sm:$0xff] }
 0x2d9   :  { %v1043_v28 = vpop.eup %1042 }
 0x2da   :  { %v286_v29 = vmul.f32 %v1043_v28, %v1041_v23  ;;  %v139_v23 = vld [vmem:[#allocation10 + $0xd0] sm:$0xff]  ;;  %v165_v28 = vld [vmem:[#allocation10 + $0x1a0] sm:$0xff] }
 0x2dc   :  { %v297_v31 = vmul.f32 %v286_v29, %v286_v29 }
 0x2de   :  { %v298_v32 = vmul.f32 %v297_v31, %v296_v30  ;;  %v158_v30 = vld [vmem:[#allocation10 + $0x168] sm:$0xff]  ;;  %v123_v31 = vld [vmem:[#allocation10 + $0x50] sm:$0xff] }
 0x2e0   :  { %v299_v33 = vmax.f32 %v298_v32, 1e-24 }
 0x2e2   :  { %1044 = vrsqrt.f32 %v299_v33  ;;  %v116_v33 = vld [vmem:[#allocation10 + $0x18] sm:$0xff] }
 0x2ef   :  { %v1045_v34 = vpop.eup %1044 }
 0x2f0   :  { %v301_v35 = vmul.f32 %v1045_v34, %v1045_v34  ;;  %v308_v36 = vmul.f32 %v1045_v34, %v286_v29  ;;  %v124_v29 = vld [vmem:[#allocation10 + $0x58] sm:$0xff]  ;;  %v150_v34 = vld [vmem:[#allocation10 + $0x128] sm:$0xff] }
 0x2f2   :  { %v302_v37 = vmul.f32 %v301_v35, %v298_v32  ;;  %v157_v32 = vld [vmem:[#allocation10 + $0x160] sm:$0xff]  ;;  %v115_v35 = vld [vmem:[#allocation10 + $0x10] sm:$0xff] }
 0x2f4   :  { %v303_v38 = vsel %vm275_vm3, %v302_v37, 0.0  ;;  %v142_v37 = vld [vmem:[#allocation10 + $0xe8] sm:$0xff] }
 0x2f5   :  { %304 = vadd.xlane.f32.xlu1 %v303_v38  ;;  %v176_v38 = vld [vmem:[#allocation10 + $0x1f8] sm:$0xff] }
 0x37e   :  { %v305_v49 = vpop.xlane.xlu1 %304 }
 0x37f   :  { %v306_v50 = vmax.f32 %v305_v49, 1e-24  ;;  %v118_v49 = vld [vmem:[#allocation10 + $0x28] sm:$0xff] }
 0x381   :  { %1046 = vrsqrt.f32 %v306_v50  ;;  %v152_v50 = vld [vmem:[#allocation10 + $0x138] sm:$0xff] }
 0x38e   :  { %v1047_v51 = vpop.eup %1046 }
 0x38f   :  { %v309_v52 = vmul.f32 %v1047_v51, %v308_v36  ;;  %v149_v36 = vld [vmem:[#allocation10 + $0x120] sm:$0xff] }
 0x390   :  { %v117_v51 = vld [vmem:[#allocation10 + $0x20] sm:$0xff] }
 0x391   :  { %1007 = vmatmul.mubr.msk.f32.vlgmr.msra.gmra.mxu1 %vm310_vm4, %v309_v52  ;;  %1009 = vmatmul.mubr.msk.f32.vlgmr.msra.gmra.mxu0 %vm310_vm4, %v309_v52 }
 0x392   :  { %414 = vmatpush1.msra.mxu1 %v107_v53  ;;  %615 = vmatpush1.msra.mxu0 %v169_v54  ;;  %v144_v53 = vld [vmem:[#allocation10 + $0xf8] sm:$0xff]  ;;  %v143_v54 = vld [vmem:[#allocation10 + $0xf0] sm:$0xff] }
 0x393   :  { %415 = vmatprep.subr.mxu1 %v100_v55  ;;  %616 = vmatprep.subr.mxu0 %v162_v56  ;;  %v136_v55 = vld [vmem:[#allocation10 + $0xb8] sm:$0xff]  ;;  %v135_v56 = vld [vmem:[#allocation10 + $0xb0] sm:$0xff] }
 0x394   :  { %416 = vmatpush1.msra.mxu1 %v99_v57  ;;  %617 = vmatpush1.msra.mxu0 %v161_v58  ;;  %v128_v57 = vld [vmem:[#allocation10 + $0x78] sm:$0xff]  ;;  %v127_v58 = vld [vmem:[#allocation10 + $0x70] sm:$0xff] }
 0x395   :  { %449 = vmatprep.mubr.f32.mxu1 %v1185_v3  ;;  %555 = vmatprep.subr.mxu1 %v112_v59  ;;  %v120_v59 = vld [vmem:[#allocation10 + $0x38] sm:$0xff] }
 0x396   :  { %618 = vmatprep.subr.mxu0 %v154_v60  ;;  %1008 = vmatmul.mubr.msk.f32.vlgmr.msra.gmra.mxu1 %vm310_vm4, %v309_v52  ;;  %v119_v60 = vld [vmem:[#allocation10 + $0x30] sm:$0xff] }
 0x397   :  { %556 = vmatpush1.msra.mxu1 %v111_v61  ;;  %619 = vmatpush1.msra.mxu0 %v153_v62 }
 0x398   :  { %557 = vmatprep.subr.mxu1 %v104_v63  ;;  %620 = vmatprep.subr.mxu0 %v146_v0  ;;  %v883_v63 = vlaneseq }
 0x399   :  { %558 = vmatpush1.msra.mxu1 %v103_v1  ;;  %621 = vmatpush1.msra.mxu0 %v145_v2 }
 0x39a   :  { %591 = vmatprep.mubr.f32.mxu1 %v1185_v3  ;;  %622 = vmatprep.subr.mxu0 %v138_v4 }
 0x39b   :  { %685 = vmatprep.subr.mxu1 %v172_v5  ;;  %1010 = vmatmul.mubr.msk.f32.vlgmr.msra.gmra.mxu1 %vm310_vm4, %v309_v52  ;;  %v151_v52 = vld [vmem:[#allocation10 + $0x130] sm:$0xff] }
 0x39c   :  { %623 = vmatpush1.msra.mxu0 %v137_v6  ;;  %686 = vmatpush1.msra.mxu1 %v171_v7 }
 0x39d   :  { %624 = vmatprep.subr.mxu0 %v130_v8  ;;  %687 = vmatprep.subr.mxu1 %v164_v10  ;;  %v96_v8 = vld [vmem:[#allocation7] sm:$0xff] }
 0x39e   :  { %625 = vmatpush1.msra.mxu0 %v129_v11  ;;  %688 = vmatpush1.msra.mxu1 %v163_v12 }
 0x39f   :  { %626 = vmatprep.subr.mxu0 %v122_v13  ;;  %689 = vmatprep.subr.mxu1 %v156_v14 }
 0x3a0   :  { %627 = vmatpush1.msra.mxu0 %v121_v15  ;;  %690 = vmatpush1.msra.mxu1 %v155_v16 }
 0x3a1   :  { %628 = vmatprep.subr.mxu0 %v114_v17  ;;  %691 = vmatprep.subr.mxu1 %v148_v18 }
 0x3a2   :  { %629 = vmatpush1.msra.mxu0 %v113_v19  ;;  %662 = vmatprep.mubr.f32.mxu0 %v1185_v3 }
 0x3a3   :  { %692 = vmatpush1.msra.mxu1 %v147_v20  ;;  %1011 = vmatmul.mubr.msk.f32.vlgmr.msra.gmra.mxu0 %vm187_vm1, %v1256_v9 }
 0x3a4   :  { %693 = vmatprep.subr.mxu1 %v140_v21  ;;  %756 = vmatprep.subr.mxu0 %v174_v22 }
 0x3a5   :  { %694 = vmatpush1.msra.mxu1 %v139_v23  ;;  %757 = vmatpush1.msra.mxu0 %v173_v24 }
 0x3a6   :  { %695 = vmatprep.subr.mxu1 %v132_v25  ;;  %758 = vmatprep.subr.mxu0 %v166_v26 }
 0x3a7   :  { %696 = vmatpush1.msra.mxu1 %v131_v27  ;;  %759 = vmatpush1.msra.mxu0 %v165_v28 }
 0x3a8   :  { %697 = vmatprep.subr.mxu1 %v124_v29  ;;  %760 = vmatprep.subr.mxu0 %v158_v30 }
 0x3a9   :  { %698 = vmatpush1.msra.mxu1 %v123_v31  ;;  %761 = vmatpush1.msra.mxu0 %v157_v32 }
 0x3aa   :  { %699 = vmatprep.subr.mxu1 %v116_v33  ;;  %762 = vmatprep.subr.mxu0 %v150_v34 }
 0x3ab   :  { %700 = vmatpush1.msra.mxu1 %v115_v35  ;;  %733 = vmatprep.mubr.f32.mxu1 %v1185_v3 }
 0x3ac   :  { %763 = vmatpush1.msra.mxu0 %v149_v36  ;;  %1012 = vmatmul.mubr.msk.f32.vlgmr.msra.gmra.mxu1 %vm187_vm1, %v1256_v9 }
 0x3ad   :  { %764 = vmatprep.subr.mxu0 %v142_v37  ;;  %827 = vmatprep.subr.mxu1 %v176_v38 }
 0x3ae   :  { %765 = vmatpush1.msra.mxu0 %v141_v39  ;;  %828 = vmatpush1.msra.mxu1 %v175_v40 }
 0x3af   :  { %766 = vmatprep.subr.mxu0 %v134_v41  ;;  %829 = vmatprep.subr.mxu1 %v168_v42 }
 0x3b0   :  { %767 = vmatpush1.msra.mxu0 %v133_v43  ;;  %830 = vmatpush1.msra.mxu1 %v167_v44 }
 0x3b1   :  { %768 = vmatprep.subr.mxu0 %v126_v45  ;;  %831 = vmatprep.subr.mxu1 %v160_v46 }
 0x3b2   :  { %769 = vmatpush1.msra.mxu0 %v125_v47  ;;  %832 = vmatpush1.msra.mxu1 %v159_v48 }
 0x3b3   :  { %770 = vmatprep.subr.mxu0 %v118_v49  ;;  %833 = vmatprep.subr.mxu1 %v152_v50 }
 0x3b4   :  { %771 = vmatpush1.msra.mxu0 %v117_v51  ;;  %804 = vmatprep.mubr.f32.mxu0 %v1185_v3 }
 0x3b5   :  { %834 = vmatpush1.msra.mxu1 %v151_v52  ;;  %1013 = vmatmul.mubr.msk.f32.vlgmr.msra.gmra.mxu0 %vm187_vm1, %v1256_v9 }
 0x3b6   :  { %835 = vmatprep.subr.mxu1 %v144_v53  ;;  %875 = vmatprep.mubr.f32.mxu1 %v1185_v3  ;;  %v884_v3 = vshrl.u32 %v883_v63, 7 }
 0x3b7   :  { %836 = vmatpush1.msra.mxu1 %v143_v54 }
 0x3b8   :  { %837 = vmatprep.subr.mxu1 %v136_v55  ;;  %v889_v4 = vsub.s32 1, %v884_v3  ;;  %v885_v7 = vsub.s32 0, %v884_v3  ;;  %v893_v11 = vsub.s32 2, %v884_v3  ;;  %v897_v15 = vsub.s32 3, %v884_v3 }
 0x3b9   :  { %838 = vmatpush1.msra.mxu1 %v135_v56  ;;  %v905_v34 = vsub.s32 5, %v884_v3  ;;  %v901_v38 = vsub.s32 4, %v884_v3  ;;  %v909_v40 = vsub.s32 6, %v884_v3  ;;  %v913_v44 = vsub.s32 7, %v884_v3 }
 0x3ba   :  { %839 = vmatprep.subr.mxu1 %v128_v57  ;;  %v890_v10 = vrot.slane %v96_v8, %v889_v4  ;;  %v886_v14 = vrot.slane %v96_v8, %v885_v7  ;;  %v894_v18 = vrot.slane %v96_v8, %v893_v11  ;;  %v898_v21 = vrot.slane %v96_v8, %v897_v15 }
 0x3bb   :  { %840 = vmatpush1.msra.mxu1 %v127_v58  ;;  %v906_v39 = vrot.slane %v96_v8, %v905_v34  ;;  %v902_v43 = vrot.slane %v96_v8, %v901_v38  ;;  %v910_v46 = vrot.slane %v96_v8, %v909_v40  ;;  %v914_v48 = vrot.slane %v96_v8, %v913_v44 }
 0x3bc   :  { %841 = vmatprep.subr.mxu1 %v120_v59 }
 0x3bd   :  { %842 = vmatpush1.msra.mxu1 %v119_v60 }
 0x3be   :  { %1014 = vmatmul.mubr.msk.f32.vlgmr.msra.gmra.mxu1 %vm187_vm1, %v1256_v9  ;;  %v1187_v9 = vmov 1983009808  }
 0x3bf   :  { %v950_v17 = vunpack.c.l.s4 %v1187_v9 }
 0x3c1   :  { %v951_v24 = vunpack.c.0.s8 %v950_v17 }
 0x3c3   :  { %v954_v30 = vsub.s32 %v951_v24, %v884_v3 }
 0x451   :  { %v380_v61 = vpop.f32.mrf.mxu1  ;;  %v522_v0 = vpop.f32.mrf.mxu0 }
 0x453   :  { %v382_v62 = vpop.f32.mrf.mxu1  ;;  %v524_v2 = vpop.f32.mrf.mxu0 }
 0x456   :  { %v451_v1 = vpop.f32.mrf.mxu1 }
 0x458   :  { %v453_v5 = vpop.f32.mrf.mxu1 }
 0x45b   :  { %v593_v12 = vpop.f32.mrf.mxu1 }
 0x45d   :  { %v595_v19 = vpop.f32.mrf.mxu1 }
 0x463   :  { %v664_v6 = vpop.f32.mrf.mxu0 }
 0x464   :  { %v923_v20 = vsub.f32 %v664_v6, %v886_v14 }
 0x465   :  { %v666_v13 = vpop.f32.mrf.mxu0 }
 0x466   :  { %v924_v16 = vsub.f32 %v666_v13, %v890_v10  ;;  %v931_v27 = vmul.f32 %v923_v20, %v380_v61 }
 0x468   :  { %v932_v23 = vmul.f32 %v924_v16, %v382_v62 }
 0x46a   :  { %v947_v29 = vcombine.low %v931_v27, %v932_v23 }
 0x46c   :  { %v735_v22 = vpop.f32.mrf.mxu1  ;;  %v955_v35 = vrot.slane %v947_v29, %v954_v30 }
 0x46d   :  { %v925_v25 = vsub.f32 %v735_v22, %v894_v18 }
 0x46e   :  { %v737_v26 = vpop.f32.mrf.mxu1 }
 0x46f   :  { %v926_v28 = vsub.f32 %v737_v26, %v898_v21  ;;  %v933_v31 = vmul.f32 %v925_v25, %v451_v1 }
 0x471   :  { %v934_v32 = vmul.f32 %v926_v28, %v453_v5 }
 0x473   :  { %v948_v33 = vcombine.low %v933_v31, %v934_v32 }
 0x475   :  { %v962_v36 = vrot.slane %v948_v33, %v954_v30  ;;  %v806_v37 = vpop.f32.mrf.mxu0 }
 0x476   :  { %v927_v47 = vsub.f32 %v806_v37, %v902_v43 }
 0x477   :  { %v963_v41 = vcombine.low %v955_v35, %v962_v36  ;;  %v808_v42 = vpop.f32.mrf.mxu0 }
 0x478   :  { %v928_v45 = vsub.f32 %v808_v42, %v906_v39  ;;  %v935_v53 = vmul.f32 %v927_v47, %v522_v0 }
 0x479   :  { %983 = vst [vmem:[#allocation11] sm:$0xff] %v963_v41 }
 0x47a   :  { %v936_v50 = vmul.f32 %v928_v45, %v524_v2 }
 0x47c   :  { %v964_v55 = vcombine.low %v935_v53, %v936_v50 }
 0x47e   :  { %v877_v49 = vpop.f32.mrf.mxu1  ;;  %v972_v59 = vrot.slane %v964_v55, %v954_v30 }
 0x47f   :  { %v929_v51 = vsub.f32 %v877_v49, %v910_v46 }
 0x480   :  { %v879_v52 = vpop.f32.mrf.mxu1 }
 0x481   :  { %v930_v54 = vsub.f32 %v879_v52, %v914_v48  ;;  %v937_v56 = vmul.f32 %v929_v51, %v593_v12 }
 0x483   :  { %v938_v57 = vmul.f32 %v930_v54, %v595_v19 }
 0x485   :  { %v965_v58 = vcombine.low %v937_v56, %v938_v57 }
 0x487   :  { %v979_v60 = vrot.slane %v965_v58, %v954_v30 }
 0x489   :  { %v980_v61 = vcombine.low %v972_v59, %v979_v60 }
 0x48b   :  { %984 = vst [vmem:[#allocation11 + $0x8] sm:$0xff] %v980_v61 }
 0x48c   :  { %1159 = shalt.err (!%p1156_p1)
}
 0x48d   :  { %994 = dma.vmem_to_hbm [thread:$0]  %s992_s28, 256, %s1298_s7, [#allocation4]  }
 0x48e   :  { %1174 = dma.done.wait [#allocation4], 256  }
 0x48f   :  { %1175 = vsyncadd [#allocation4], 4294967040 }
 0x490   :  { %998 = vsyncpa [#allocation3], 1 }
 0x491   :  { %999 = vsyncpa [#allocation6], 1 }
 0x492   :  { %1000 = vsyncpa [#allocation9], 1 }
 0x493   :  { %1001 = vsyncpa [#allocation4], 1 }

</bundles_post_ra>
